<compile_context>
chip_gen: v6e
topology: v6e:2x2x1
jax: 0.10.0
libtpu: 0.0.40
codegen_flags: <defaults>
</compile_context>

<pallas_src>
import functools

import jax
import jax.numpy as jnp
from jax import lax
from jax.experimental import pallas as pl
from jax.experimental.pallas import tpu as pltpu

INPUT_DIM = 13
HIDDEN_DIM = 100
OUTPUT_DIM = 1
HIDDEN_PAD = 128      # lane-dense hidden width
TM_DEFAULT = 1024     # batch tile (512-2048 sweet spot; a few hundred KiB VMEM)


def _round_up(a, m):
    return (a + m - 1) // m * m


def _mlp_kernel(x_ref, w1_ref, b1_ref, w2_ref, b2_ref, o_ref):
    # fc1 on the MXU: (TM, 13) @ (13, 128) -> (TM, 128), f32 accumulation.
    h = jnp.dot(x_ref[...], w1_ref[...], preferred_element_type=jnp.float32)
    h = jnp.tanh(h + b1_ref[...])                       # (TM, 128), lane dense (EUP)
    # fc2: contract the w2 row against the hidden (lane) axis of every row:
    # (1, 128) x (TM, 128) -> (1, TM).  Lane-dense result => unmasked stores.
    y = lax.dot_general(w2_ref[...], h, (((1,), (1,)), ((), ())),
                        preferred_element_type=jnp.float32)
    y = y + b2_ref[...]                                 # (1, TM) + (1, 1)
    o_ref[...] = y.reshape(1, 1, -1).astype(o_ref.dtype)


@functools.partial(jax.jit, static_argnames=("block_m",))
def feedforward_mlp(x, w1, b1, w2, b2, *, block_m=TM_DEFAULT):
    """x: (B, 13) f32; w1: (13, 100); b1: (100,); w2: (100, 1); b2: (1,) -> (B, 1)."""
    B, in_dim = x.shape
    hid = w1.shape[1]

    # Batch tile: multiple of 128 so the (1,1,tm) output slab is lane-dense and
    # the x tile sublane count is a multiple of 8; shrink for small batches.
    tm = min(block_m, _round_up(max(B, 1), 128))
    tm = max(tm, 128)
    b_pad = _round_up(B, tm)
    n_tiles = b_pad // tm

    # Zero-pad the hidden dim to a full 128-lane width: tanh(0 + 0) = 0 and the
    # padded w2 lanes are 0, so the padding contributes exactly nothing.
    w1p = jnp.zeros((in_dim, HIDDEN_PAD), w1.dtype).at[:, :hid].set(w1)
    b1p = jnp.zeros((1, HIDDEN_PAD), b1.dtype).at[0, :hid].set(b1)
    w2p = jnp.zeros((1, HIDDEN_PAD), w2.dtype).at[0, :hid].set(w2[:, 0])
    b2p = b2.reshape(1, 1)

    # Zero-pad the batch up to a whole number of tiles (sliced off afterwards).
    if b_pad != B:
        x = jnp.zeros((b_pad, in_dim), x.dtype).at[:B, :].set(x)

    out = pl.pallas_call(
        _mlp_kernel,
        out_shape=jax.ShapeDtypeStruct((n_tiles, 1, tm), x.dtype),
        grid=(n_tiles,),
        in_specs=[
            pl.BlockSpec((tm, in_dim), lambda i: (i, 0)),          # streamed x tile
            pl.BlockSpec((in_dim, HIDDEN_PAD), lambda i: (0, 0)),  # resident W1
            pl.BlockSpec((1, HIDDEN_PAD), lambda i: (0, 0)),       # resident b1
            pl.BlockSpec((1, HIDDEN_PAD), lambda i: (0, 0)),       # resident w2 row
            pl.BlockSpec((1, 1), lambda i: (0, 0)),                # resident b2
        ],
        out_specs=pl.BlockSpec((1, 1, tm), lambda i: (i, 0, 0)),   # lane-dense slab
        compiler_params=pltpu.CompilerParams(
            dimension_semantics=("parallel",)),
    )(x, w1p, b1p, w2p, b2p)

    # (n_tiles, 1, tm) row-major flatten is exactly batch order -> (B, 1).
    return out.reshape(b_pad, 1)[:B]


def init_params(key):
    """Deterministic init mirroring nn.Linear's U(-1/sqrt(fan_in), 1/sqrt(fan_in))."""
    k1, k2, k3, k4 = jax.random.split(key, 4)
    bound1 = 1.0 / jnp.sqrt(INPUT_DIM)
    bound2 = 1.0 / jnp.sqrt(HIDDEN_DIM)
    # stored as (in, out) == transpose of torch's (out, in) weight
    w1 = jax.random.uniform(k1, (INPUT_DIM, HIDDEN_DIM), jnp.float32, -bound1, bound1)
    b1 = jax.random.uniform(k2, (HIDDEN_DIM,), jnp.float32, -bound1, bound1)
    w2 = jax.random.uniform(k3, (HIDDEN_DIM, OUTPUT_DIM), jnp.float32, -bound2, bound2)
    b2 = jax.random.uniform(k4, (OUTPUT_DIM,), jnp.float32, -bound2, bound2)
    return w1, b1, w2, b2


if __name__ == "__main__":
    key = jax.random.PRNGKey(0)
    kx, kp, kx2 = jax.random.split(key, 3)

    w1, b1, w2, b2 = init_params(kp)

    # Small batch: single tile; exercises batch padding up to the 128-row tile.
    x_small = jax.random.normal(kx, (8, INPUT_DIM), jnp.float32)
    out_small = jax.block_until_ready(feedforward_mlp(x_small, w1, b1, w2, b2))
    ref_small = jnp.tanh(x_small @ w1 + b1) @ w2 + b2
    assert out_small.shape == (8, OUTPUT_DIM)
    assert jnp.allclose(out_small, ref_small, atol=1e-4, rtol=1e-4)

    # Multi-tile batch (still small): exercises the grid and resident weights.
    x_multi = jax.random.normal(kx2, (300, INPUT_DIM), jnp.float32)
    out_multi = jax.block_until_ready(
        feedforward_mlp(x_multi, w1, b1, w2, b2, block_m=128))
    ref_multi = jnp.tanh(x_multi @ w1 + b1) @ w2 + b2
    assert out_multi.shape == (300, OUTPUT_DIM)
    assert jnp.allclose(out_multi, ref_multi, atol=1e-4, rtol=1e-4)

    print("KERNEL_OK")
</pallas_src>

<mosaic_0001>
module attributes {stable_mosaic.version = 11 : i64} {
  func.func @_mlp_kernel(%arg0: i32, %arg1: memref<128x13xf32, #tpu.memory_space<vmem>>, %arg2: memref<13x128xf32, #tpu.memory_space<vmem>>, %arg3: memref<1x128xf32, #tpu.memory_space<vmem>>, %arg4: memref<1x128xf32, #tpu.memory_space<vmem>>, %arg5: memref<1x1xf32, #tpu.memory_space<vmem>>, %arg6: memref<1x1x128xf32, #tpu.memory_space<vmem>>) attributes {dimension_semantics = [#tpu.dimension_semantics<parallel>], iteration_bounds = array<i64: 1>, scalar_prefetch = 0 : i64, scratch_operands = 0 : i64, tpu.core_type = #tpu.core_type<tc>, window_params = [{transform_indices = @transform_0, window_bounds = array<i64: 128, 13>}, {pipeline_mode = #tpu.pipeline_mode<synchronous>, transform_indices = @transform_1, window_bounds = array<i64: 13, 128>}, {pipeline_mode = #tpu.pipeline_mode<synchronous>, transform_indices = @transform_2, window_bounds = array<i64: 1, 128>}, {pipeline_mode = #tpu.pipeline_mode<synchronous>, transform_indices = @transform_3, window_bounds = array<i64: 1, 128>}, {pipeline_mode = #tpu.pipeline_mode<synchronous>, transform_indices = @transform_4, window_bounds = array<i64: 1, 1>}, {transform_indices = @transform_5, window_bounds = array<i64: 1, 1, 128>}]} {
    %c0 = arith.constant 0 : index
    %c0_0 = arith.constant 0 : index
    %0 = vector.load %arg1[%c0, %c0_0] : memref<128x13xf32, #tpu.memory_space<vmem>>, vector<128x13xf32>
    %c0_1 = arith.constant 0 : index
    %c0_2 = arith.constant 0 : index
    %1 = vector.load %arg2[%c0_1, %c0_2] : memref<13x128xf32, #tpu.memory_space<vmem>>, vector<13x128xf32>
    %cst = arith.constant dense<0.000000e+00> : vector<128x128xf32>
    %2 = tpu.matmul %0, %1, %cst {dimension_numbers = #tpu.dot_dimension_numbers<[1], [0], [0], [1], [0, 0, 1, 1], [], []>} : vector<128x13xf32>, vector<13x128xf32>, vector<128x128xf32> -> vector<128x128xf32>
    %c0_3 = arith.constant 0 : index
    %c0_4 = arith.constant 0 : index
    %3 = vector.load %arg3[%c0_3, %c0_4] : memref<1x128xf32, #tpu.memory_space<vmem>>, vector<1x128xf32>
    %4 = vector.broadcast %3 : vector<1x128xf32> to vector<128x128xf32>
    %5 = arith.addf %2, %4 : vector<128x128xf32>
    %6 = math.tanh %5 : vector<128x128xf32>
    %c0_5 = arith.constant 0 : index
    %c0_6 = arith.constant 0 : index
    %7 = vector.load %arg4[%c0_5, %c0_6] : memref<1x128xf32, #tpu.memory_space<vmem>>, vector<1x128xf32>
    %cst_7 = arith.constant dense<0.000000e+00> : vector<1x128xf32>
    %8 = tpu.matmul %7, %6, %cst_7 {dimension_numbers = #tpu.dot_dimension_numbers<[1], [1], [0], [0], [0, 0, 1, 0], [], []>} : vector<1x128xf32>, vector<128x128xf32>, vector<1x128xf32> -> vector<1x128xf32>
    %c0_8 = arith.constant 0 : index
    %c0_9 = arith.constant 0 : index
    %9 = vector.load %arg5[%c0_8, %c0_9] : memref<1x1xf32, #tpu.memory_space<vmem>>, vector<1x1xf32>
    %10 = vector.broadcast %9 : vector<1x1xf32> to vector<1x128xf32>
    %11 = arith.addf %8, %10 : vector<1x128xf32>
    %12 = vector.shape_cast %11 : vector<1x128xf32> to vector<1x1x128xf32>
    %c0_10 = arith.constant 0 : index
    %c0_11 = arith.constant 0 : index
    %c0_12 = arith.constant 0 : index
    %13 = vector.load %arg6[%c0_10, %c0_11, %c0_12] : memref<1x1x128xf32, #tpu.memory_space<vmem>>, vector<1x1x128xf32>
    tpu.vector_store %arg6[%c0_10, %c0_11, %c0_12], %12 {strides = array<i32>} : memref<1x1x128xf32, #tpu.memory_space<vmem>>, vector<1x1x128xf32>,
    return
  }
  func.func @transform_0(%arg0: i32) -> (i32, i32) {
    %c0_i32 = arith.constant 0 : i32
    %c0_i32_0 = arith.constant 0 : i32
    return %arg0, %c0_i32 : i32, i32
  }
  func.func @transform_1(%arg0: i32) -> (i32, i32) {
    %c0_i32 = arith.constant 0 : i32
    %c0_i32_0 = arith.constant 0 : i32
    %c0_i32_1 = arith.constant 0 : i32
    return %c0_i32, %c0_i32_0 : i32, i32
  }
  func.func @transform_2(%arg0: i32) -> (i32, i32) {
    %c0_i32 = arith.constant 0 : i32
    %c0_i32_0 = arith.constant 0 : i32
    %c0_i32_1 = arith.constant 0 : i32
    return %c0_i32, %c0_i32_0 : i32, i32
  }
  func.func @transform_3(%arg0: i32) -> (i32, i32) {
    %c0_i32 = arith.constant 0 : i32
    %c0_i32_0 = arith.constant 0 : i32
    %c0_i32_1 = arith.constant 0 : i32
    return %c0_i32, %c0_i32_0 : i32, i32
  }
  func.func @transform_4(%arg0: i32) -> (i32, i32) {
    %c0_i32 = arith.constant 0 : i32
    %c0_i32_0 = arith.constant 0 : i32
    %c0_i32_1 = arith.constant 0 : i32
    return %c0_i32, %c0_i32_0 : i32, i32
  }
  func.func @transform_5(%arg0: i32) -> (i32, i32, i32) {
    %c0_i32 = arith.constant 0 : i32
    %c0_i32_0 = arith.constant 0 : i32
    %c0_i32_1 = arith.constant 0 : i32
    return %arg0, %c0_i32, %c0_i32_0 : i32, i32, i32
  }
}

</mosaic_0001>

<bundles_post_ra>
// kernel: feedforward_mlp.1
= control target key start
LH: loop header
LB: loop body
LE: loop exit
PB: predicated region body
PF: predicated region fallthrough
CT: control target
= control target key end

     0   :  { %vm96_vm0 = vcmask 1044480   ;;  %vm47_vm1 = vcmask 105472   ;;  %v499_v18 = vmov 0.0   ;;  %vm500_vm2 = vmmov 0   ;;  %s661_s1 = inlined_call_operand.vmem [shape: f32[13,128], index: 1, kind: input, shape index: {}]   ;;  %s662_s0 = inlined_call_operand.vmem [shape: f32[128,13], index: 0, kind: input, shape index: {}]   ;;  %s663_s4 = inlined_call_operand.<no memory space> [shape: f32[1,1], index: 4, kind: input, shape index: {}]   ;;  %s664_s2 = inlined_call_operand.vmem [shape: f32[1,128], index: 2, kind: input, shape index: {}]   ;;  %s665_s3 = inlined_call_operand.vmem [shape: f32[1,128], index: 3, kind: input, shape index: {}]   ;;  %s666_s5 = inlined_call_operand.vmem [shape: f32[1,1,128], index: 5, kind: output, shape index: {}]  }
   0x1   :  { %v39_v0 = vld [vmem:[%s661_s1 + $0x8] sm:$0x1f]  ;;  %v38_v1 = vld [vmem:[%s661_s1] sm:$0xff]  ;;  %v24_v4 = vld [vmem:[%s662_s0 + $0x10] sm:$0xff]  ;;  %428 = vmatprep.subr.mxu1 %v499_v18  ;;  %460 = vmatprep.mubr.msk.f32.mxu1 %vm500_vm2, %v499_v18  ;;  %v501_v19 = vmov 0   ;;  %v10_v20 = vstv %s663_s4 }
   0x2   :  { %v22_v2 = vld [vmem:[%s662_s0] sm:$0xff]  ;;  %400 = vmatprep.subr.msk.mxu0 %vm96_vm0, %v39_v0  ;;  %v23_v3 = vld [vmem:[%s662_s0 + $0x8] sm:$0xff]  ;;  %v25_v5 = vld [vmem:[%s662_s0 + $0x18] sm:$0xff]  ;;  %466 = vset.pattern.permute.xlu0 %v501_v19  ;;  %11 = vst [vmem:[#allocation2] sm:$0x1] %v10_v20 }
   0x3   :  { %404 = vmatprep.mubr.msk.f32.mxu0 %vm47_vm1, %v22_v2  ;;  %401 = vmatpush3.msk.msra.mxu0 %vm96_vm0, %v39_v0  ;;  %v26_v6 = vld [vmem:[%s662_s0 + $0x20] sm:$0xff]  ;;  %v27_v7 = vld [vmem:[%s662_s0 + $0x28] sm:$0xff]  ;;  %v28_v8 = vld [vmem:[%s662_s0 + $0x30] sm:$0xff] }
   0x4   :  { %402 = vmatprep.subr.mxu0 %v38_v1  ;;  %v29_v9 = vld [vmem:[%s662_s0 + $0x38] sm:$0xff]  ;;  %v30_v10 = vld [vmem:[%s662_s0 + $0x40] sm:$0xff]  ;;  %v31_v11 = vld [vmem:[%s662_s0 + $0x48] sm:$0xff] }
   0x5   :  { %403 = vmatpush3.msra.mxu0 %v38_v1  ;;  %v32_v12 = vld [vmem:[%s662_s0 + $0x50] sm:$0xff]  ;;  %v33_v13 = vld [vmem:[%s662_s0 + $0x58] sm:$0xff]  ;;  %v34_v14 = vld [vmem:[%s662_s0 + $0x60] sm:$0xff] }
   0x6   :  { %405 = vmatmul.mubr.msk.f32.vlgmr.msra.gmra.mxu0 %vm47_vm1, %v23_v3  ;;  %v35_v15 = vld [vmem:[%s662_s0 + $0x68] sm:$0xff]  ;;  %v36_v16 = vld [vmem:[%s662_s0 + $0x70] sm:$0xff]  ;;  %v37_v17 = vld [vmem:[%s662_s0 + $0x78] sm:$0xff] }
   0x7   :  { %407 = vmatprep.mubr.msk.f32.mxu0 %vm47_vm1, %v24_v4  ;;  %v618_v36 = vld [vmem:[%s664_s2] ss:$0 sm:$0xff] }
   0x9   :  { %v262_v21 = vld [vmem:[#allocation2] sm:$0x1] }
   0xa   :  { %408 = vmatmul.mubr.msk.f32.gmra.mxu0 %vm47_vm1, %v25_v5  ;;  %265 = vperm.xlu0 %466, %v262_v21  }
   0xb   :  { %410 = vmatprep.mubr.msk.f32.mxu0 %vm47_vm1, %v26_v6 }
   0xe   :  { %411 = vmatmul.mubr.msk.f32.gmra.mxu0 %vm47_vm1, %v27_v7  ;;  %v261_v7 = vld [vmem:[%s665_s3] sm:$0x1] }
   0xf   :  { %413 = vmatprep.mubr.msk.f32.mxu0 %vm47_vm1, %v28_v8  ;;  %v268_v8 = vlaneseq }
  0x12   :  { %414 = vmatmul.mubr.msk.f32.gmra.mxu0 %vm47_vm1, %v29_v9  ;;  %v269_v9 = vshrl.u32 %v268_v8, 7 }
  0x13   :  { %416 = vmatprep.mubr.msk.f32.mxu0 %vm47_vm1, %v30_v10 }
  0x14   :  { %v270_v10 = vsub.s32 0, %v269_v9 }
  0x16   :  { %417 = vmatmul.mubr.msk.f32.gmra.mxu0 %vm47_vm1, %v31_v11 }
  0x17   :  { %419 = vmatprep.mubr.msk.f32.mxu0 %vm47_vm1, %v32_v12 }
  0x1a   :  { %420 = vmatmul.mubr.msk.f32.gmra.mxu0 %vm47_vm1, %v33_v13 }
  0x1b   :  { %422 = vmatprep.mubr.msk.f32.mxu0 %vm47_vm1, %v34_v14 }
  0x1e   :  { %423 = vmatmul.mubr.msk.f32.gmra.mxu0 %vm47_vm1, %v35_v15 }
  0x1f   :  { %425 = vmatprep.mubr.msk.f32.mxu0 %vm47_vm1, %v36_v16 }
  0x22   :  { %426 = vmatmul.mubr.msk.f32.gmra.mxu0 %vm47_vm1, %v37_v17 }
  0x85   :  { %v266_v11 = vpop.permute.xlu0 %265 }
  0x86   :  { %v271_v12 = vrot.slane %v266_v11, %v270_v10 }
  0xc6   :  { %v607_v22 = vpop.f32.mrf.mxu0 }
  0xc7   :  { %v172_v63 = vadd.f32 %v607_v22, %v618_v36 }
  0xc8   :  { %v609_v23 = vpop.f32.mrf.mxu0 }
  0xc9   :  { %v167_v1 = vadd.f32 %v618_v36, %v609_v23 }
  0xca   :  { %v611_v24 = vpop.f32.mrf.mxu0 }
  0xcb   :  { %v182_v59 = vadd.f32 %v611_v24, %v618_v36 }
  0xcc   :  { %v613_v25 = vpop.f32.mrf.mxu0 }
  0xcd   :  { %v177_v61 = vadd.f32 %v618_v36, %v613_v25 }
  0xce   :  { %v412_v26 = vpop.f32.mrf.mxu0 }
  0xcf   :  { %v192_v55 = vadd.f32 %v412_v26, %v618_v36 }
  0xd0   :  { %v186_v27 = vpop.f32.mrf.mxu0 }
  0xd1   :  { %v187_v57 = vadd.f32 %v618_v36, %v186_v27 }
  0xd2   :  { %v415_v28 = vpop.f32.mrf.mxu0 }
  0xd3   :  { %v202_v51 = vadd.f32 %v415_v28, %v618_v36 }
  0xd4   :  { %v196_v29 = vpop.f32.mrf.mxu0 }
  0xd5   :  { %v197_v53 = vadd.f32 %v618_v36, %v196_v29 }
  0xd6   :  { %v418_v30 = vpop.f32.mrf.mxu0 }
  0xd7   :  { %v212_v47 = vadd.f32 %v418_v30, %v618_v36 }
  0xd8   :  { %v206_v31 = vpop.f32.mrf.mxu0 }
  0xd9   :  { %v207_v49 = vadd.f32 %v618_v36, %v206_v31 }
  0xda   :  { %v421_v32 = vpop.f32.mrf.mxu0 }
  0xdb   :  { %v222_v43 = vadd.f32 %v421_v32, %v618_v36 }
  0xdc   :  { %v216_v33 = vpop.f32.mrf.mxu0 }
  0xdd   :  { %v217_v45 = vadd.f32 %v618_v36, %v216_v33 }
  0xde   :  { %v424_v34 = vpop.f32.mrf.mxu0 }
  0xdf   :  { %v232_v41 = vadd.f32 %v424_v34, %v618_v36 }
  0xe0   :  { %v226_v35 = vpop.f32.mrf.mxu0 }
  0xe1   :  { %v227_v42 = vadd.f32 %v618_v36, %v226_v35 }
  0xe2   :  { %v427_v37 = vpop.f32.mrf.mxu0 }
  0xe3   :  { %v242_v38 = vadd.f32 %v427_v37, %v618_v36 }
  0xe4   :  { %v236_v39 = vpop.f32.mrf.mxu0 }
  0xe5   :  { %467 = vtanh.f32 %v242_v38  ;;  %v237_v40 = vadd.f32 %v618_v36, %v236_v39 }
  0xe7   :  { %469 = vtanh.f32 %v237_v40 }
  0xe8   :  { %471 = vtanh.f32 %v232_v41 }
  0xe9   :  { %473 = vtanh.f32 %v227_v42 }
  0xea   :  { %475 = vtanh.f32 %v222_v43 }
  0xeb   :  { %477 = vtanh.f32 %v217_v45 }
  0xec   :  { %479 = vtanh.f32 %v212_v47 }
  0xed   :  { %481 = vtanh.f32 %v207_v49 }
  0xee   :  { %483 = vtanh.f32 %v202_v51 }
  0xef   :  { %485 = vtanh.f32 %v197_v53 }
  0xf0   :  { %487 = vtanh.f32 %v192_v55 }
  0xf1   :  { %489 = vtanh.f32 %v187_v57 }
  0xf2   :  { %v468_v44 = vpop.eup %467  ;;  %491 = vtanh.f32 %v182_v59 }
  0xf3   :  { %429 = vmatpush3.xpose.msra.mxu1 %v468_v44  ;;  %493 = vtanh.f32 %v177_v61 }
  0xf4   :  { %430 = vmatprep.subr.mxu1 %v499_v18  ;;  %v470_v46 = vpop.eup %469  ;;  %495 = vtanh.f32 %v172_v63 }
  0xf5   :  { %v472_v48 = vpop.eup %471  ;;  %497 = vtanh.f32 %v167_v1 }
  0xf6   :  { %v474_v50 = vpop.eup %473 }
  0xf7   :  { %431 = vmatpush3.xpose.msra.mxu1 %v470_v46  ;;  %v476_v52 = vpop.eup %475 }
  0xf8   :  { %432 = vmatprep.subr.mxu1 %v499_v18  ;;  %v478_v54 = vpop.eup %477 }
  0xf9   :  { %v480_v56 = vpop.eup %479 }
  0xfa   :  { %v482_v58 = vpop.eup %481 }
  0xfb   :  { %433 = vmatpush3.xpose.msra.mxu1 %v472_v48  ;;  %v484_v60 = vpop.eup %483 }
  0xfc   :  { %434 = vmatprep.subr.mxu1 %v499_v18  ;;  %v486_v62 = vpop.eup %485 }
  0xfd   :  { %v488_v0 = vpop.eup %487 }
  0xfe   :  { %v490_v2 = vpop.eup %489 }
  0xff   :  { %435 = vmatpush3.xpose.msra.mxu1 %v474_v50  ;;  %v492_v3 = vpop.eup %491 }
 0x100   :  { %436 = vmatprep.subr.mxu1 %v499_v18  ;;  %v494_v4 = vpop.eup %493 }
 0x101   :  { %v496_v5 = vpop.eup %495 }
 0x102   :  { %v498_v6 = vpop.eup %497 }
 0x103   :  { %437 = vmatpush3.xpose.msra.mxu1 %v476_v52 }
 0x104   :  { %438 = vmatprep.subr.mxu1 %v499_v18 }
 0x107   :  { %439 = vmatpush3.xpose.msra.mxu1 %v478_v54 }
 0x108   :  { %440 = vmatprep.subr.mxu1 %v499_v18 }
 0x10b   :  { %441 = vmatpush3.xpose.msra.mxu1 %v480_v56 }
 0x10c   :  { %442 = vmatprep.subr.mxu1 %v499_v18 }
 0x10f   :  { %443 = vmatpush3.xpose.msra.mxu1 %v482_v58 }
 0x110   :  { %444 = vmatprep.subr.mxu1 %v499_v18 }
 0x113   :  { %445 = vmatpush3.xpose.msra.mxu1 %v484_v60 }
 0x114   :  { %446 = vmatprep.subr.mxu1 %v499_v18 }
 0x117   :  { %447 = vmatpush3.xpose.msra.mxu1 %v486_v62 }
 0x118   :  { %448 = vmatprep.subr.mxu1 %v499_v18 }
 0x11b   :  { %449 = vmatpush3.xpose.msra.mxu1 %v488_v0 }
 0x11c   :  { %450 = vmatprep.subr.mxu1 %v499_v18 }
 0x11f   :  { %451 = vmatpush3.xpose.msra.mxu1 %v490_v2 }
 0x120   :  { %452 = vmatprep.subr.mxu1 %v499_v18 }
 0x123   :  { %453 = vmatpush3.xpose.msra.mxu1 %v492_v3 }
 0x124   :  { %454 = vmatprep.subr.mxu1 %v499_v18 }
 0x127   :  { %455 = vmatpush3.xpose.msra.mxu1 %v494_v4 }
 0x128   :  { %456 = vmatprep.subr.mxu1 %v499_v18 }
 0x12b   :  { %457 = vmatpush3.xpose.msra.mxu1 %v496_v5 }
 0x12c   :  { %458 = vmatprep.subr.mxu1 %v499_v18 }
 0x12f   :  { %459 = vmatpush3.xpose.msra.mxu1 %v498_v6 }
 0x132   :  { %461 = vmatmul.mubr.f32.vlgmr.msra.gmra.mxu1 %v261_v7 }
 0x1f2   :  { %v338_v13 = vpop.f32.mrf.mxu1 }
 0x1f3   :  { %v339_v14 = vadd.f32 %v338_v13, %v271_v12 }
 0x1f4   :  { %v462_v15 = vpop.f32.mrf.mxu1 }
 0x1f5   :  { %342 = vst [vmem:[%s666_s5] sm:$0x1] %v339_v14 }

</bundles_post_ra>
